<compile_context>
chip_gen: v7x
topology: tpu7x:2x2x1
jax: 0.10.0
libtpu: 0.0.40
codegen_flags: <defaults>
</compile_context>

<pallas_src>
import functools

import numpy as np
import jax
import jax.numpy as jnp
from jax.experimental import pallas as pl
from jax.experimental.pallas import tpu as pltpu


# ----------------------------- in-kernel helpers -----------------------------

def _capped_log(x):
    # Mirrors cappedLog: log(where(x + 1e-10 > 1 - 1e-10, x, x + 1e-10))
    cushioned = x + 1e-10
    return jnp.log(jnp.where(cushioned > 1.0 - 1e-10, x, cushioned))


# ------------------------------- Pallas kernel -------------------------------

def _moe_loss_kernel(*refs, stream_log_meta):
    """Lane-dense, fully sublane-packed hot path.

    logits_ref  : [E, 8, TN] pre-sigmoid expert predictions
    meta_ref    : [E, 8, TN] gating weights repeated per allele
    logmeta_ref : [E, 8, TN] cappedLog(meta) (only if stream_log_meta)
    tpack_ref   : [2, 8, TN] row 0 = smoothed targets, row 1 = weights[targets]*valid
    loss_ref    : [1, 1, 1]  per-core partial sum (written only at last step)
    acc_ref     : [8, TN]    VMEM accumulator, resident across the reduction axis
    """
    if stream_log_meta:
        logits_ref, meta_ref, logmeta_ref, tpack_ref, loss_ref, acc_ref = refs
    else:
        logits_ref, meta_ref, tpack_ref, loss_ref, acc_ref = refs
        logmeta_ref = None

    j = pl.program_id(1)

    @pl.when(j == 0)
    def _():
        acc_ref[...] = jnp.zeros_like(acc_ref)

    t = tpack_ref[0].astype(jnp.float32)          # (8, TN) smoothed targets (0 on padding)
    tw = tpack_ref[1].astype(jnp.float32)         # (8, TN) weight * valid   (0 on padding)
    one = jnp.float32(1.0)
    eps = jnp.float32(1e-10)

    num = None     # sum_e joint_e * (log(expert_prob_e) + log(meta_e))
    denom = None   # sum_e joint_e
    n_experts = logits_ref.shape[0]
    for e_idx in range(n_experts):                # static unroll over the tiny expert axis
        p = jax.nn.sigmoid(logits_ref[e_idx].astype(jnp.float32))   # (8, TN)
        m = meta_ref[e_idx].astype(jnp.float32)
        ep = t * p + (one - t) * (one - p)
        jnt = ep * m + eps
        lm = logmeta_ref[e_idx].astype(jnp.float32) if stream_log_meta else _capped_log(m)
        a = _capped_log(ep) + lm
        num = jnt * a if num is None else num + jnt * a
        denom = jnt if denom is None else denom + jnt

    # EM E-step posterior folded in: tw * sum_e posterior_e * A_e
    #   = tw * (sum_e joint_e * A_e) / (sum_e joint_e)
    contrib = tw * num * pl.reciprocal(denom, approx=False)          # exact: keeps 1e-5 tol
    acc_ref[...] = acc_ref[...] + contrib                            # VPU-only accumulate

    @pl.when(j == pl.num_programs(1) - 1)
    def _():
        # one-time epilogue: full reduce of the resident accumulator
        loss_ref[...] = jnp.reshape(jnp.sum(acc_ref[...]), (1, 1, 1))


# --------------------------------- wrapper -----------------------------------

def moe_loss(predictions, targets_int, num_alleles_per_site, *,
             weights, regularizer=0.0, smoothing=0.0, training=True,
             lane_tile=8192, num_cores=1, core_parallel=False,
             stream_log_meta=True):
    """JAX/Pallas equivalent of MoELoss.forward (provideIndividualLoss=False).

    predictions = (list of E arrays [N, 1] pre-sigmoid logits, meta [num_sites, E])
    targets_int : [N] int labels (index into the `weights` table)
    num_alleles_per_site : static Python list, sum == N
    Returns scalar -totalLoss.

    Generation hints: v7x -> num_cores=2, core_parallel=True; v5e -> stream_log_meta=False.
    # TODO(synk): the PyTorch module mutates its `regularizer` buffer (decay) each
    # call; that stateful side effect is not reproduced here.
    # TODO(synk): provideIndividualLoss / aux_loss branch is not implemented.
    """
    expert_pred_list, meta = predictions

    # [E, N] directly: no [N, E] materialization and no full-size transpose pass.
    expert_logits = jnp.stack([jnp.reshape(p, (-1,)) for p in expert_pred_list], axis=0)
    E, N = expert_logits.shape

    # gating entropy on the un-repeated meta: tiny reduction, leave to XLA
    meta_f32 = meta.astype(jnp.float32)
    ent_raw = -jnp.sum(meta_f32 * _capped_log(meta_f32))

    # repeat the tiny [E, num_sites] tables along the allele axis (lane-dense, no .T pass)
    reps = np.asarray(num_alleles_per_site)
    meta_en = jnp.repeat(meta.T, reps, axis=1, total_repeat_length=N)            # [E, N]
    if stream_log_meta:
        logmeta_en = jnp.repeat(_capped_log(meta_f32.T), reps, axis=1,
                                total_repeat_length=N)                           # [E, N] f32

    # per-element targets: smoothing + weights gather precomputed in the wrapper
    t_raw = targets_int.astype(jnp.float32)
    if training and float(smoothing) != 0.0:
        t = t_raw + t_raw * (-smoothing) + (1.0 - t_raw) * smoothing
    else:
        t = t_raw
    tw = jnp.asarray(weights, jnp.float32)[targets_int]                          # [N]

    # ---- tiling: fold the allele axis into (8 sublanes) x (lanes) -------------
    tl = max(128, -(-int(lane_tile) // 128) * 128)        # multiple of 128
    lanes_needed = -(-N // (8 * num_cores))
    lanes_needed = max(128, -(-lanes_needed // 128) * 128)
    tl = min(tl, lanes_needed)                            # clamp for tiny problems
    chunk = 8 * num_cores * tl
    n_pad = -(-N // chunk) * chunk
    pad = n_pad - N
    nl = n_pad // 8
    tiles_per_core = nl // (num_cores * tl)

    def fold(x2d):  # [R, N] -> [R, 8, nl]   (pad lanes -> 0, masked via tw == 0)
        return jnp.pad(x2d, ((0, 0), (0, pad))).reshape(x2d.shape[0], 8, nl)

    operands = [fold(expert_logits), fold(meta_en)]
    lane_map = lambda c, j, tpc=tiles_per_core: (0, 0, c * tpc + j)
    in_specs = [pl.BlockSpec((E, 8, tl), lane_map),
                pl.BlockSpec((E, 8, tl), lane_map)]
    if stream_log_meta:
        operands.append(fold(logmeta_en))
        in_specs.append(pl.BlockSpec((E, 8, tl), lane_map))
    operands.append(fold(jnp.stack([t, tw], axis=0)))
    in_specs.append(pl.BlockSpec((2, 8, tl), lane_map))

    if core_parallel and num_cores > 1:
        dim_sems = (pltpu.CORE_PARALLEL, pltpu.ARBITRARY)   # real 2-TC split on v7x
    else:
        dim_sems = ("parallel", "arbitrary")

    partials = pl.pallas_call(
        functools.partial(_moe_loss_kernel, stream_log_meta=stream_log_meta),
        out_shape=jax.ShapeDtypeStruct((num_cores, 1, 1), jnp.float32),
        grid_spec=pltpu.PrefetchScalarGridSpec(
            num_scalar_prefetch=0,
            grid=(num_cores, tiles_per_core),
            in_specs=in_specs,
            out_specs=pl.BlockSpec((1, 1, 1), lambda c, j: (c, 0, 0)),
            scratch_shapes=[pltpu.VMEM((8, tl), jnp.float32)],
        ),
        compiler_params=pltpu.CompilerParams(dimension_semantics=dim_sems),
    )(*operands)

    total = jnp.sum(partials)
    if training:
        total = total + ent_raw * jnp.float32(regularizer)
    return -total


# ------------------------------ pure-JAX reference ---------------------------

def moe_loss_reference(predictions, targets_int, num_alleles_per_site, *,
                       weights, regularizer=0.0, smoothing=0.0, training=True):
    expert_pred_list, meta = predictions
    expert_logits = jnp.squeeze(jnp.stack(expert_pred_list, axis=1), axis=2)
    N = expert_logits.shape[0]

    tw = jnp.asarray(weights, jnp.float32)[targets_int][:, None]
    t = targets_int.astype(jnp.float32)[:, None]
    ent_raw = -jnp.sum(meta * _capped_log(meta))
    meta_rep = jnp.repeat(meta, np.asarray(num_alleles_per_site), axis=0,
                          total_repeat_length=N)
    e = jax.nn.sigmoid(expert_logits)
    if training:
        t = t + t * (-smoothing) + (1.0 - t) * smoothing
    expert_probs = t * e + (1.0 - t) * (1.0 - e)
    joint = expert_probs * meta_rep + 1e-10
    posterior = joint / jnp.sum(joint, axis=1, keepdims=True)
    total = jnp.sum(posterior * (_capped_log(expert_probs) + _capped_log(meta_rep)) * tw)
    if training:
        total = total + ent_raw * jnp.float32(regularizer)
    return -total


# ----------------------------------- main ------------------------------------

if __name__ == "__main__":
    key = jax.random.PRNGKey(0)
    num_sites = 8
    num_experts = 4
    num_alleles_per_site = [2, 3, 1, 4, 2, 2, 1, 1]   # sum == 16
    N = sum(num_alleles_per_site)

    k_logits, k_meta, k_tgt = jax.random.split(key, 3)
    # expert predictions: list of E tensors of shape [N, 1] (pre-sigmoid), as in PyTorch
    expert_preds = [
        jax.random.normal(jax.random.fold_in(k_logits, e), (N, 1), jnp.float32)
        for e in range(num_experts)
    ]
    meta = jax.nn.softmax(
        jax.random.normal(k_meta, (num_sites, num_experts), jnp.float32), axis=-1)
    targets_int = jax.random.bernoulli(k_tgt, 0.5, (N,)).astype(jnp.int32)

    weights = jnp.array([1.0, 2.0], jnp.float32)
    regularizer = 0.1
    smoothing = 0.05

    loss = moe_loss((expert_preds, meta), targets_int, num_alleles_per_site,
                    weights=weights, regularizer=regularizer,
                    smoothing=smoothing, training=True)
    loss = jax.block_until_ready(loss)

    ref = moe_loss_reference((expert_preds, meta), targets_int, num_alleles_per_site,
                             weights=weights, regularizer=regularizer,
                             smoothing=smoothing, training=True)
    np.testing.assert_allclose(np.asarray(loss), np.asarray(ref), rtol=1e-5, atol=1e-5)
    print("KERNEL_OK")
</pallas_src>

<mosaic_0001>
module attributes {stable_mosaic.version = 11 : i64} {
  func.func @_moe_loss_kernel(%arg0: i32, %arg1: i32, %arg2: memref<4x8x128xf32, #tpu.memory_space<vmem>>, %arg3: memref<4x8x128xf32, #tpu.memory_space<vmem>>, %arg4: memref<4x8x128xf32, #tpu.memory_space<vmem>>, %arg5: memref<2x8x128xf32, #tpu.memory_space<vmem>>, %arg6: memref<1x1x1xf32, #tpu.memory_space<vmem>>, %arg7: memref<8x128xf32, #tpu.memory_space<vmem>>) attributes {dimension_semantics = [#tpu.dimension_semantics<parallel>, #tpu.dimension_semantics<arbitrary>], iteration_bounds = array<i64: 1, 1>, scalar_prefetch = 0 : i64, scratch_operands = 1 : i64, tpu.core_type = #tpu.core_type<tc>, window_params = [{transform_indices = @transform_0, window_bounds = array<i64: 4, 8, 128>}, {transform_indices = @transform_1, window_bounds = array<i64: 4, 8, 128>}, {transform_indices = @transform_2, window_bounds = array<i64: 4, 8, 128>}, {transform_indices = @transform_3, window_bounds = array<i64: 2, 8, 128>}, {transform_indices = @transform_4, window_bounds = array<i64: 1, 1, 1>}]} {
    %c0_i32 = arith.constant 0 : i32
    %0 = arith.cmpi eq, %arg1, %c0_i32 : i32
    %1 = arith.extui %0 : i1 to i32
    %c0_i32_0 = arith.constant 0 : i32
    %2 = arith.cmpi ne, %1, %c0_i32_0 : i32
    scf.if %2 {
      %cst_68 = arith.constant 0.000000e+00 : f32
      %138 = vector.broadcast %cst_68 : f32 to vector<8x128xf32>
      %c0_69 = arith.constant 0 : index
      %c0_70 = arith.constant 0 : index
      %139 = vector.load %arg7[%c0_69, %c0_70] : memref<8x128xf32, #tpu.memory_space<vmem>>, vector<8x128xf32>
      tpu.vector_store %arg7[%c0_69, %c0_70], %138 {strides = array<i32>} : memref<8x128xf32, #tpu.memory_space<vmem>>, vector<8x128xf32>,
    } else {
    }
    %c0 = arith.constant 0 : index
    %c0_1 = arith.constant 0 : index
    %c0_2 = arith.constant 0 : index
    %3 = vector.load %arg5[%c0, %c0_1, %c0_2] : memref<2x8x128xf32, #tpu.memory_space<vmem>>, vector<1x8x128xf32>
    %4 = vector.shape_cast %3 : vector<1x8x128xf32> to vector<8x128xf32>
    %c1 = arith.constant 1 : index
    %c0_3 = arith.constant 0 : index
    %c0_4 = arith.constant 0 : index
    %5 = vector.load %arg5[%c1, %c0_3, %c0_4] : memref<2x8x128xf32, #tpu.memory_space<vmem>>, vector<1x8x128xf32>
    %6 = vector.shape_cast %5 : vector<1x8x128xf32> to vector<8x128xf32>
    %c0_5 = arith.constant 0 : index
    %c0_6 = arith.constant 0 : index
    %c0_7 = arith.constant 0 : index
    %7 = vector.load %arg2[%c0_5, %c0_6, %c0_7] : memref<4x8x128xf32, #tpu.memory_space<vmem>>, vector<1x8x128xf32>
    %8 = vector.shape_cast %7 : vector<1x8x128xf32> to vector<8x128xf32>
    %9 = arith.negf %8 : vector<8x128xf32>
    %10 = math.exp %9 : vector<8x128xf32>
    %cst = arith.constant 1.000000e+00 : f32
    %11 = vector.broadcast %cst : f32 to vector<8x128xf32>
    %12 = arith.addf %11, %10 : vector<8x128xf32>
    %13 = arith.divf %11, %12 : vector<8x128xf32>
    %c0_8 = arith.constant 0 : index
    %c0_9 = arith.constant 0 : index
    %c0_10 = arith.constant 0 : index
    %14 = vector.load %arg3[%c0_8, %c0_9, %c0_10] : memref<4x8x128xf32, #tpu.memory_space<vmem>>, vector<1x8x128xf32>
    %15 = vector.shape_cast %14 : vector<1x8x128xf32> to vector<8x128xf32>
    %16 = arith.mulf %4, %13 : vector<8x128xf32>
    %cst_11 = arith.constant 1.000000e+00 : f32
    %17 = vector.broadcast %cst_11 : f32 to vector<8x128xf32>
    %18 = arith.subf %17, %4 : vector<8x128xf32>
    %cst_12 = arith.constant 1.000000e+00 : f32
    %19 = vector.broadcast %cst_12 : f32 to vector<8x128xf32>
    %20 = arith.subf %19, %13 : vector<8x128xf32>
    %21 = arith.mulf %18, %20 : vector<8x128xf32>
    %22 = arith.addf %16, %21 : vector<8x128xf32>
    %23 = arith.mulf %22, %15 : vector<8x128xf32>
    %cst_13 = arith.constant 1.000000e-10 : f32
    %24 = vector.broadcast %cst_13 : f32 to vector<8x128xf32>
    %25 = arith.addf %23, %24 : vector<8x128xf32>
    %c0_14 = arith.constant 0 : index
    %c0_15 = arith.constant 0 : index
    %c0_16 = arith.constant 0 : index
    %26 = vector.load %arg4[%c0_14, %c0_15, %c0_16] : memref<4x8x128xf32, #tpu.memory_space<vmem>>, vector<1x8x128xf32>
    %27 = vector.shape_cast %26 : vector<1x8x128xf32> to vector<8x128xf32>
    %cst_17 = arith.constant 1.000000e-10 : f32
    %28 = vector.broadcast %cst_17 : f32 to vector<8x128xf32>
    %29 = arith.addf %22, %28 : vector<8x128xf32>
    %cst_18 = arith.constant 1.000000e+00 : f32
    %30 = vector.broadcast %cst_18 : f32 to vector<8x128xf32>
    %31 = arith.cmpf ogt, %29, %30 : vector<8x128xf32>
    %32 = arith.select %31, %22, %29 : vector<8x128xi1>, vector<8x128xf32>
    %33 = math.log %32 : vector<8x128xf32>
    %34 = arith.addf %33, %27 : vector<8x128xf32>
    %35 = arith.mulf %25, %34 : vector<8x128xf32>
    %c1_19 = arith.constant 1 : index
    %c0_20 = arith.constant 0 : index
    %c0_21 = arith.constant 0 : index
    %36 = vector.load %arg2[%c1_19, %c0_20, %c0_21] : memref<4x8x128xf32, #tpu.memory_space<vmem>>, vector<1x8x128xf32>
    %37 = vector.shape_cast %36 : vector<1x8x128xf32> to vector<8x128xf32>
    %38 = arith.negf %37 : vector<8x128xf32>
    %39 = math.exp %38 : vector<8x128xf32>
    %cst_22 = arith.constant 1.000000e+00 : f32
    %40 = vector.broadcast %cst_22 : f32 to vector<8x128xf32>
    %41 = arith.addf %40, %39 : vector<8x128xf32>
    %42 = arith.divf %40, %41 : vector<8x128xf32>
    %c1_23 = arith.constant 1 : index
    %c0_24 = arith.constant 0 : index
    %c0_25 = arith.constant 0 : index
    %43 = vector.load %arg3[%c1_23, %c0_24, %c0_25] : memref<4x8x128xf32, #tpu.memory_space<vmem>>, vector<1x8x128xf32>
    %44 = vector.shape_cast %43 : vector<1x8x128xf32> to vector<8x128xf32>
    %45 = arith.mulf %4, %42 : vector<8x128xf32>
    %cst_26 = arith.constant 1.000000e+00 : f32
    %46 = vector.broadcast %cst_26 : f32 to vector<8x128xf32>
    %47 = arith.subf %46, %4 : vector<8x128xf32>
    %cst_27 = arith.constant 1.000000e+00 : f32
    %48 = vector.broadcast %cst_27 : f32 to vector<8x128xf32>
    %49 = arith.subf %48, %42 : vector<8x128xf32>
    %50 = arith.mulf %47, %49 : vector<8x128xf32>
    %51 = arith.addf %45, %50 : vector<8x128xf32>
    %52 = arith.mulf %51, %44 : vector<8x128xf32>
    %cst_28 = arith.constant 1.000000e-10 : f32
    %53 = vector.broadcast %cst_28 : f32 to vector<8x128xf32>
    %54 = arith.addf %52, %53 : vector<8x128xf32>
    %c1_29 = arith.constant 1 : index
    %c0_30 = arith.constant 0 : index
    %c0_31 = arith.constant 0 : index
    %55 = vector.load %arg4[%c1_29, %c0_30, %c0_31] : memref<4x8x128xf32, #tpu.memory_space<vmem>>, vector<1x8x128xf32>
    %56 = vector.shape_cast %55 : vector<1x8x128xf32> to vector<8x128xf32>
    %cst_32 = arith.constant 1.000000e-10 : f32
    %57 = vector.broadcast %cst_32 : f32 to vector<8x128xf32>
    %58 = arith.addf %51, %57 : vector<8x128xf32>
    %cst_33 = arith.constant 1.000000e+00 : f32
    %59 = vector.broadcast %cst_33 : f32 to vector<8x128xf32>
    %60 = arith.cmpf ogt, %58, %59 : vector<8x128xf32>
    %61 = arith.select %60, %51, %58 : vector<8x128xi1>, vector<8x128xf32>
    %62 = math.log %61 : vector<8x128xf32>
    %63 = arith.addf %62, %56 : vector<8x128xf32>
    %64 = arith.mulf %54, %63 : vector<8x128xf32>
    %65 = arith.addf %35, %64 : vector<8x128xf32>
    %66 = arith.addf %25, %54 : vector<8x128xf32>
    %c2 = arith.constant 2 : index
    %c0_34 = arith.constant 0 : index
    %c0_35 = arith.constant 0 : index
    %67 = vector.load %arg2[%c2, %c0_34, %c0_35] : memref<4x8x128xf32, #tpu.memory_space<vmem>>, vector<1x8x128xf32>
    %68 = vector.shape_cast %67 : vector<1x8x128xf32> to vector<8x128xf32>
    %69 = arith.negf %68 : vector<8x128xf32>
    %70 = math.exp %69 : vector<8x128xf32>
    %cst_36 = arith.constant 1.000000e+00 : f32
    %71 = vector.broadcast %cst_36 : f32 to vector<8x128xf32>
    %72 = arith.addf %71, %70 : vector<8x128xf32>
    %73 = arith.divf %71, %72 : vector<8x128xf32>
    %c2_37 = arith.constant 2 : index
    %c0_38 = arith.constant 0 : index
    %c0_39 = arith.constant 0 : index
    %74 = vector.load %arg3[%c2_37, %c0_38, %c0_39] : memref<4x8x128xf32, #tpu.memory_space<vmem>>, vector<1x8x128xf32>
    %75 = vector.shape_cast %74 : vector<1x8x128xf32> to vector<8x128xf32>
    %76 = arith.mulf %4, %73 : vector<8x128xf32>
    %cst_40 = arith.constant 1.000000e+00 : f32
    %77 = vector.broadcast %cst_40 : f32 to vector<8x128xf32>
    %78 = arith.subf %77, %4 : vector<8x128xf32>
    %cst_41 = arith.constant 1.000000e+00 : f32
    %79 = vector.broadcast %cst_41 : f32 to vector<8x128xf32>
    %80 = arith.subf %79, %73 : vector<8x128xf32>
    %81 = arith.mulf %78, %80 : vector<8x128xf32>
    %82 = arith.addf %76, %81 : vector<8x128xf32>
    %83 = arith.mulf %82, %75 : vector<8x128xf32>
    %cst_42 = arith.constant 1.000000e-10 : f32
    %84 = vector.broadcast %cst_42 : f32 to vector<8x128xf32>
    %85 = arith.addf %83, %84 : vector<8x128xf32>
    %c2_43 = arith.constant 2 : index
    %c0_44 = arith.constant 0 : index
    %c0_45 = arith.constant 0 : index
    %86 = vector.load %arg4[%c2_43, %c0_44, %c0_45] : memref<4x8x128xf32, #tpu.memory_space<vmem>>, vector<1x8x128xf32>
    %87 = vector.shape_cast %86 : vector<1x8x128xf32> to vector<8x128xf32>
    %cst_46 = arith.constant 1.000000e-10 : f32
    %88 = vector.broadcast %cst_46 : f32 to vector<8x128xf32>
    %89 = arith.addf %82, %88 : vector<8x128xf32>
    %cst_47 = arith.constant 1.000000e+00 : f32
    %90 = vector.broadcast %cst_47 : f32 to vector<8x128xf32>
    %91 = arith.cmpf ogt, %89, %90 : vector<8x128xf32>
    %92 = arith.select %91, %82, %89 : vector<8x128xi1>, vector<8x128xf32>
    %93 = math.log %92 : vector<8x128xf32>
    %94 = arith.addf %93, %87 : vector<8x128xf32>
    %95 = arith.mulf %85, %94 : vector<8x128xf32>
    %96 = arith.addf %65, %95 : vector<8x128xf32>
    %97 = arith.addf %66, %85 : vector<8x128xf32>
    %c3 = arith.constant 3 : index
    %c0_48 = arith.constant 0 : index
    %c0_49 = arith.constant 0 : index
    %98 = vector.load %arg2[%c3, %c0_48, %c0_49] : memref<4x8x128xf32, #tpu.memory_space<vmem>>, vector<1x8x128xf32>
    %99 = vector.shape_cast %98 : vector<1x8x128xf32> to vector<8x128xf32>
    %100 = arith.negf %99 : vector<8x128xf32>
    %101 = math.exp %100 : vector<8x128xf32>
    %cst_50 = arith.constant 1.000000e+00 : f32
    %102 = vector.broadcast %cst_50 : f32 to vector<8x128xf32>
    %103 = arith.addf %102, %101 : vector<8x128xf32>
    %104 = arith.divf %102, %103 : vector<8x128xf32>
    %c3_51 = arith.constant 3 : index
    %c0_52 = arith.constant 0 : index
    %c0_53 = arith.constant 0 : index
    %105 = vector.load %arg3[%c3_51, %c0_52, %c0_53] : memref<4x8x128xf32, #tpu.memory_space<vmem>>, vector<1x8x128xf32>
    %106 = vector.shape_cast %105 : vector<1x8x128xf32> to vector<8x128xf32>
    %107 = arith.mulf %4, %104 : vector<8x128xf32>
    %cst_54 = arith.constant 1.000000e+00 : f32
    %108 = vector.broadcast %cst_54 : f32 to vector<8x128xf32>
    %109 = arith.subf %108, %4 : vector<8x128xf32>
    %cst_55 = arith.constant 1.000000e+00 : f32
    %110 = vector.broadcast %cst_55 : f32 to vector<8x128xf32>
    %111 = arith.subf %110, %104 : vector<8x128xf32>
    %112 = arith.mulf %109, %111 : vector<8x128xf32>
    %113 = arith.addf %107, %112 : vector<8x128xf32>
    %114 = arith.mulf %113, %106 : vector<8x128xf32>
    %cst_56 = arith.constant 1.000000e-10 : f32
    %115 = vector.broadcast %cst_56 : f32 to vector<8x128xf32>
    %116 = arith.addf %114, %115 : vector<8x128xf32>
    %c3_57 = arith.constant 3 : index
    %c0_58 = arith.constant 0 : index
    %c0_59 = arith.constant 0 : index
    %117 = vector.load %arg4[%c3_57, %c0_58, %c0_59] : memref<4x8x128xf32, #tpu.memory_space<vmem>>, vector<1x8x128xf32>
    %118 = vector.shape_cast %117 : vector<1x8x128xf32> to vector<8x128xf32>
    %cst_60 = arith.constant 1.000000e-10 : f32
    %119 = vector.broadcast %cst_60 : f32 to vector<8x128xf32>
    %120 = arith.addf %113, %119 : vector<8x128xf32>
    %cst_61 = arith.constant 1.000000e+00 : f32
    %121 = vector.broadcast %cst_61 : f32 to vector<8x128xf32>
    %122 = arith.cmpf ogt, %120, %121 : vector<8x128xf32>
    %123 = arith.select %122, %113, %120 : vector<8x128xi1>, vector<8x128xf32>
    %124 = math.log %123 : vector<8x128xf32>
    %125 = arith.addf %124, %118 : vector<8x128xf32>
    %126 = arith.mulf %116, %125 : vector<8x128xf32>
    %127 = arith.addf %96, %126 : vector<8x128xf32>
    %128 = arith.addf %97, %116 : vector<8x128xf32>
    %129 = arith.mulf %6, %127 : vector<8x128xf32>
    %130 = tpu.reciprocal %128 : vector<8x128xf32> -> vector<8x128xf32>
    %131 = arith.mulf %129, %130 : vector<8x128xf32>
    %c0_62 = arith.constant 0 : index
    %c0_63 = arith.constant 0 : index
    %132 = vector.load %arg7[%c0_62, %c0_63] : memref<8x128xf32, #tpu.memory_space<vmem>>, vector<8x128xf32>
    %133 = arith.addf %132, %131 : vector<8x128xf32>
    %c0_64 = arith.constant 0 : index
    %c0_65 = arith.constant 0 : index
    %134 = vector.load %arg7[%c0_64, %c0_65] : memref<8x128xf32, #tpu.memory_space<vmem>>, vector<8x128xf32>
    tpu.vector_store %arg7[%c0_64, %c0_65], %133 {strides = array<i32>} : memref<8x128xf32, #tpu.memory_space<vmem>>, vector<8x128xf32>,
    %c0_i32_66 = arith.constant 0 : i32
    %135 = arith.cmpi eq, %arg1, %c0_i32_66 : i32
    %136 = arith.extui %135 : i1 to i32
    %c0_i32_67 = arith.constant 0 : i32
    %137 = arith.cmpi ne, %136, %c0_i32_67 : i32
    scf.if %137 {
      %c0_68 = arith.constant 0 : index
      %c0_69 = arith.constant 0 : index
      %138 = vector.load %arg7[%c0_68, %c0_69] : memref<8x128xf32, #tpu.memory_space<vmem>>, vector<8x128xf32>
      %139 = vector.shape_cast %138 : vector<8x128xf32> to vector<1x8x128xf32>
      %cst_70 = arith.constant dense<0.000000e+00> : vector<1xf32>
      %140 = vector.multi_reduction <add>, %139, %cst_70 [1, 2] : vector<1x8x128xf32> to vector<1xf32>
      %141 = vector.shape_cast %140 : vector<1xf32> to vector<1x1x1xf32>
      %142 = vector.extract %141[0, 0, 0] : f32 from vector<1x1x1xf32>
      %143 = vector.broadcast %142 : f32 to vector<1x1x1xf32>
      %c0_71 = arith.constant 0 : index
      %c0_72 = arith.constant 0 : index
      %c0_73 = arith.constant 0 : index
      %144 = vector.load %arg6[%c0_71, %c0_72, %c0_73] : memref<1x1x1xf32, #tpu.memory_space<vmem>>, vector<1x1x1xf32>
      tpu.vector_store %arg6[%c0_71, %c0_72, %c0_73], %143 {strides = array<i32>} : memref<1x1x1xf32, #tpu.memory_space<vmem>>, vector<1x1x1xf32>,
    } else {
    }
    return
  }
  func.func @transform_0(%arg0: i32, %arg1: i32) -> (i32, i32, i32) {
    %c1_i32 = arith.constant 1 : i32
    %0 = arith.muli %arg0, %c1_i32 : i32
    %1 = arith.addi %0, %arg1 : i32
    %c0_i32 = arith.constant 0 : i32
    %c0_i32_0 = arith.constant 0 : i32
    %c0_i32_1 = arith.constant 0 : i32
    return %c0_i32, %c0_i32_0, %1 : i32, i32, i32
  }
  func.func @transform_1(%arg0: i32, %arg1: i32) -> (i32, i32, i32) {
    %c1_i32 = arith.constant 1 : i32
    %0 = arith.muli %arg0, %c1_i32 : i32
    %1 = arith.addi %0, %arg1 : i32
    %c0_i32 = arith.constant 0 : i32
    %c0_i32_0 = arith.constant 0 : i32
    %c0_i32_1 = arith.constant 0 : i32
    return %c0_i32, %c0_i32_0, %1 : i32, i32, i32
  }
  func.func @transform_2(%arg0: i32, %arg1: i32) -> (i32, i32, i32) {
    %c1_i32 = arith.constant 1 : i32
    %0 = arith.muli %arg0, %c1_i32 : i32
    %1 = arith.addi %0, %arg1 : i32
    %c0_i32 = arith.constant 0 : i32
    %c0_i32_0 = arith.constant 0 : i32
    %c0_i32_1 = arith.constant 0 : i32
    return %c0_i32, %c0_i32_0, %1 : i32, i32, i32
  }
  func.func @transform_3(%arg0: i32, %arg1: i32) -> (i32, i32, i32) {
    %c1_i32 = arith.constant 1 : i32
    %0 = arith.muli %arg0, %c1_i32 : i32
    %1 = arith.addi %0, %arg1 : i32
    %c0_i32 = arith.constant 0 : i32
    %c0_i32_0 = arith.constant 0 : i32
    %c0_i32_1 = arith.constant 0 : i32
    return %c0_i32, %c0_i32_0, %1 : i32, i32, i32
  }
  func.func @transform_4(%arg0: i32, %arg1: i32) -> (i32, i32, i32) {
    %c0_i32 = arith.constant 0 : i32
    %c0_i32_0 = arith.constant 0 : i32
    %c0_i32_1 = arith.constant 0 : i32
    return %arg0, %c0_i32, %c0_i32_0 : i32, i32, i32
  }
}

</mosaic_0001>

<bundles_post_ra>
// kernel: tpu_custom_call.1
= control target key start
LH: loop header
LB: loop body
LE: loop exit
PB: predicated region body
PF: predicated region fallthrough
CT: control target
= control target key end

     0   :  { %9 = vsyncpa [#allocation4], 0  ;;  %s515_s0 = inlined_call_operand.hbm [shape: f32[4,8,128], index: 0, kind: input, shape index: {}]   ;;  %s516_s1 = inlined_call_operand.hbm [shape: f32[4,8,128], index: 1, kind: input, shape index: {}]   ;;  %s517_s2 = inlined_call_operand.hbm [shape: f32[4,8,128], index: 2, kind: input, shape index: {}]   ;;  %s518_s3 = inlined_call_operand.hbm [shape: f32[2,8,128], index: 3, kind: input, shape index: {}]   ;;  %s519_s4 = inlined_call_operand.hbm [shape: f32[1,1,1], index: 4, kind: output, shape index: {}]  }
   0x1   :  { %10 = vsyncpa [#allocation7], 0 }
   0x2   :  { %11 = vsyncpa [#allocation10], 0 }
   0x3   :  { %12 = vsyncpa [#allocation5], 0  ;;  %s397_s15 = smov [#allocation6]   ;;  %s398_s17 = smov [#allocation3]  }
   0x4   :  { %s36_s16 = sshll.u32 %s397_s15, 4  ;;  %s21_s18 = sshll.u32 %s398_s17, 4  ;;  %s37_s16 = int_to_ptr.vmem [resolvable:$true] %s36_s16  ;;  %s429_s18 = int_to_ptr.vmem [resolvable:$true] %s21_s18 }
   0x5   :  { %s279_s21 = scalar_lea.hbm %s516_s1, 512 }
   0x6   :  { %p280_p0 = scmp.ne.s32.totalorder %s516_s1, %s279_s21  ;;  %p283_p1 = scmp.lt.u32.totalorder %s279_s21, %s516_s1 }
   0x8   :  { %p285_p2 = pnand %p283_p1, %p280_p0 }
   0xa   :  { %288 = shalt.err (!%p285_p2)
}
   0xb   :  { %s289_s26 = scalar_lea.vmem %s37_s16, 512  ;;  %p294_p4 = scmp.lt.s32.totalorder %s37_s16, %s37_s16 }
   0xc   :  { %p290_p3 = scmp.ne.s32.totalorder %s37_s16, %s289_s26  ;;  %p295_p5 = scmp.lt.s32.totalorder %s289_s26, %s289_s26 }
   0xe   :  { %p296_p6 = por %p295_p5, %p294_p4 }
  0x10   :  { %p297_p7 = pnand %p296_p6, %p290_p3 }
  0x12   :  { %300 = shalt.err (!%p297_p7)
}
  0x13   :  { %s399_s27 = smov 128   ;;  %s400_s28 = smov 8  }
  0x14   :  { %42 = dma.hbm_to_vmem [thread:$0]  %s516_s1, 512, %s37_s16, [#allocation7], %s399_s27, %s399_s27, %s400_s28  }
  0x15   :  { %s301_s7 = scalar_lea.hbm %s515_s0, 512 }
  0x16   :  { %p302_p8 = scmp.ne.s32.totalorder %s515_s0, %s301_s7  ;;  %p305_p9 = scmp.lt.u32.totalorder %s301_s7, %s515_s0 }
  0x18   :  { %p307_p10 = pnand %p305_p9, %p302_p8 }
  0x1a   :  { %310 = shalt.err (!%p307_p10)
}
  0x1b   :  { %s311_s12 = scalar_lea.vmem %s429_s18, 512  ;;  %p316_p12 = scmp.lt.s32.totalorder %s429_s18, %s429_s18 }
  0x1c   :  { %p312_p11 = scmp.ne.s32.totalorder %s429_s18, %s311_s12  ;;  %p317_p13 = scmp.lt.s32.totalorder %s311_s12, %s311_s12 }
  0x1e   :  { %p318_p0 = por %p317_p13, %p316_p12 }
  0x20   :  { %p319_p1 = pnand %p318_p0, %p312_p11 }
  0x22   :  { %322 = shalt.err (!%p319_p1)
}
  0x23   :  { %27 = dma.hbm_to_vmem [thread:$0]  %s515_s0, 512, %s429_s18, [#allocation4], %s399_s27, %s399_s27, %s400_s28  }
  0x24   :  { %s401_s14 = smov [#allocation8]   ;;  %s402_s16 = smov [#allocation9]  }
  0x25   :  { %s51_s15 = sshll.u32 %s401_s14, 4  ;;  %s66_s17 = sshll.u32 %s402_s16, 4  ;;  %s52_s15 = int_to_ptr.vmem [resolvable:$true] %s51_s15  ;;  %s466_s17 = int_to_ptr.vmem [resolvable:$true] %s66_s17 }
  0x26   :  { %s323_s21 = scalar_lea.hbm %s517_s2, 512 }
  0x27   :  { %p324_p2 = scmp.ne.s32.totalorder %s517_s2, %s323_s21  ;;  %p327_p3 = scmp.lt.u32.totalorder %s323_s21, %s517_s2 }
  0x29   :  { %p329_p4 = pnand %p327_p3, %p324_p2 }
  0x2b   :  { %332 = shalt.err (!%p329_p4)
}
  0x2c   :  { %s333_s0 = scalar_lea.vmem %s52_s15, 512  ;;  %p338_p6 = scmp.lt.s32.totalorder %s52_s15, %s52_s15 }
  0x2d   :  { %p334_p5 = scmp.ne.s32.totalorder %s52_s15, %s333_s0  ;;  %p339_p7 = scmp.lt.s32.totalorder %s333_s0, %s333_s0 }
  0x2f   :  { %p340_p8 = por %p339_p7, %p338_p6 }
  0x31   :  { %p341_p9 = pnand %p340_p8, %p334_p5 }
  0x33   :  { %344 = shalt.err (!%p341_p9)
}
  0x34   :  { %57 = dma.hbm_to_vmem [thread:$0]  %s517_s2, 512, %s52_s15, [#allocation7], %s399_s27, %s399_s27, %s400_s28  }
  0x35   :  { %s345_s5 = scalar_lea.hbm %s518_s3, 256 }
  0x36   :  { %p346_p10 = scmp.ne.s32.totalorder %s518_s3, %s345_s5  ;;  %p349_p11 = scmp.lt.u32.totalorder %s345_s5, %s518_s3 }
  0x38   :  { %p351_p12 = pnand %p349_p11, %p346_p10 }
  0x3a   :  { %354 = shalt.err (!%p351_p12)
}
  0x3b   :  { %s355_s10 = scalar_lea.vmem %s466_s17, 256  ;;  %p360_p0 = scmp.lt.s32.totalorder %s466_s17, %s466_s17 }
  0x3c   :  { %p356_p13 = scmp.ne.s32.totalorder %s466_s17, %s355_s10  ;;  %p361_p1 = scmp.lt.s32.totalorder %s355_s10, %s355_s10 }
  0x3e   :  { %p362_p2 = por %p361_p1, %p360_p0 }
  0x40   :  { %p363_p3 = pnand %p362_p2, %p356_p13 }
  0x42   :  { %366 = shalt.err (!%p363_p3)
}
  0x43   :  { %72 = dma.hbm_to_vmem [thread:$0]  %s518_s3, 256, %s466_s17, [#allocation10], %s399_s27, %s399_s27, %s400_s28  }
  0x44   :  { %389 = dma.done.wait [#allocation4], 512  }
  0x45   :  { %390 = vsyncadd [#allocation4], 4294966784 }
  0x46   :  { %391 = dma.done.wait [#allocation7], 1024  }
  0x47   :  { %392 = vsyncadd [#allocation7], 4294966272 }
  0x48   :  { %393 = dma.done.wait [#allocation10], 256  }
  0x49   :  { %394 = vsyncadd [#allocation10], 4294967040  ;;  %v97_v0 = vld [vmem:[#allocation3] sm:$0xff]  ;;  %v121_v2 = vld [vmem:[#allocation3 + $0x8] sm:$0xff]  ;;  %s403_s3 = smov [#allocation11]   ;;  %vm221_vm4 = vcmask 0  }
  0x4a   :  { %v240_v1 = vmul.f32 -1.442695, %v97_v0  ;;  %v241_v3 = vmul.f32 -1.442695, %v121_v2  ;;  %v148_v4 = vld [vmem:[#allocation3 + $0x10] sm:$0xff]  ;;  %v175_v6 = vld [vmem:[#allocation3 + $0x18] sm:$0xff] }
  0x4b   :  { %v242_v5 = vmul.f32 -1.442695, %v148_v4  ;;  %v243_v7 = vmul.f32 -1.442695, %v175_v6  ;;  %v94_v16 = vld [vmem:[#allocation9] sm:$0xff]  ;;  %v129_v34 = vld [vmem:[#allocation6 + $0x8] sm:$0xff] }
  0x4c   :  { %253 = vpow2.f32 %v240_v1  ;;  %v106_v17 = vsub.f32 1.0, %v94_v16  ;;  %v104_v29 = vld [vmem:[#allocation6] sm:$0xff]  ;;  %v156_v37 = vld [vmem:[#allocation6 + $0x10] sm:$0xff]  ;;  %v183_v48 = vld [vmem:[#allocation6 + $0x18] sm:$0xff]  ;;  %s229_s27 = sshll.u32 %s403_s3, 4  ;;  %s230_s27 = int_to_ptr.vmem [resolvable:$true] %s229_s27 }
  0x4d   :  { %255 = vpow2.f32 %v241_v3  ;;  %v112_v61 = vld [vmem:[#allocation8] sm:$0xff]  ;;  %v137_v1 = vld [vmem:[#allocation8 + $0x8] sm:$0xff]  ;;  %v164_v4 = vld [vmem:[#allocation8 + $0x10] sm:$0xff]  ;;  %s367_s12 = scalar_lea.vmem %s230_s27, 16  ;;  %s371_s1 = scalar_lea.vmem %s230_s27, 32 }
  0x4e   :  { %257 = vpow2.f32 %v242_v5  ;;  %p368_p4 = scmp.ne.s32.totalorder %s230_s27, %s367_s12  ;;  %p372_p5 = scmp.lt.s32.totalorder %s230_s27, %s230_s27 }
  0x4f   :  { %259 = vpow2.f32 %v243_v7  ;;  %p373_p6 = scmp.lt.s32.totalorder %s371_s1, %s367_s12 }
  0x51   :  { %p374_p7 = por %p373_p6, %p372_p5 }
  0x53   :  { %p375_p8 = pnand %p374_p7, %p368_p4 }
  0x56   :  { %v254_v8 = vpop.eup %253 }
  0x57   :  { %v256_v9 = vpop.eup %255  ;;  %v101_v10 = vadd.f32 1.0, %v254_v8 }
  0x58   :  { %v258_v11 = vpop.eup %257  ;;  %v125_v12 = vadd.f32 1.0, %v256_v9 }
  0x59   :  { %v260_v13 = vpop.eup %259  ;;  %261 = vrcp.f32 %v101_v10  ;;  %v152_v14 = vadd.f32 1.0, %v258_v11 }
  0x5a   :  { %263 = vrcp.f32 %v125_v12  ;;  %v179_v15 = vadd.f32 1.0, %v260_v13  ;;  %v191_v12 = vld [vmem:[#allocation8 + $0x18] sm:$0xff] }
  0x5b   :  { %265 = vrcp.f32 %v152_v14 }
  0x5c   :  { %267 = vrcp.f32 %v179_v15 }
  0x63   :  { %v262_v18 = vpop.eup %261 }
  0x64   :  { %v264_v19 = vpop.eup %263  ;;  %v105_v20 = vmul.f32 %v262_v18, %v94_v16  ;;  %v107_v21 = vsub.f32 1.0, %v262_v18 }
  0x65   :  { %v266_v22 = vpop.eup %265  ;;  %v130_v23 = vmul.f32 %v264_v19, %v94_v16  ;;  %v131_v24 = vsub.f32 1.0, %v264_v19  ;;  %v96_v19 = vld [vmem:[#allocation9 + $0x8] sm:$0xff] }
  0x66   :  { %v268_v25 = vpop.eup %267  ;;  %v108_v26 = vmul.f32 %v107_v21, %v106_v17  ;;  %v157_v27 = vmul.f32 %v266_v22, %v94_v16  ;;  %v158_v28 = vsub.f32 1.0, %v266_v22 }
  0x67   :  { %v132_v30 = vmul.f32 %v131_v24, %v106_v17  ;;  %v184_v31 = vmul.f32 %v268_v25, %v94_v16  ;;  %v185_v32 = vsub.f32 1.0, %v268_v25 }
  0x68   :  { %v109_v33 = vadd.f32 %v108_v26, %v105_v20  ;;  %v159_v35 = vmul.f32 %v158_v28, %v106_v17 }
  0x69   :  { %v133_v36 = vadd.f32 %v132_v30, %v130_v23  ;;  %v186_v38 = vmul.f32 %v185_v32, %v106_v17 }
  0x6a   :  { %v110_v39 = vmul.f32 %v109_v33, %v104_v29  ;;  %v113_v40 = vadd.f32 1e-10, %v109_v33  ;;  %v160_v41 = vadd.f32 %v159_v35, %v157_v27 }
  0x6b   :  { %v134_v42 = vmul.f32 %v133_v36, %v129_v34  ;;  %v138_v43 = vadd.f32 1e-10, %v133_v36  ;;  %v187_v44 = vadd.f32 %v186_v38, %v184_v31 }
  0x6c   :  { %v111_v45 = vadd.f32 1e-10, %v110_v39  ;;  %vm114_vm0 = vcmp.gt.f32.partialorder %v113_v40, 1.0  ;;  %v161_v46 = vmul.f32 %v160_v41, %v156_v37  ;;  %v165_v47 = vadd.f32 1e-10, %v160_v41 }
  0x6d   :  { %v115_v49 = vsel %vm114_vm0, %v109_v33, %v113_v40  ;;  %v135_v50 = vadd.f32 1e-10, %v134_v42  ;;  %vm139_vm1 = vcmp.gt.f32.partialorder %v138_v43, 1.0  ;;  %v188_v53 = vmul.f32 %v187_v44, %v183_v48 }
  0x6e   :  { %269 = vlog2.f32 %v115_v49  ;;  %v140_v51 = vsel %vm139_vm1, %v133_v36, %v138_v43  ;;  %vm166_vm2 = vcmp.gt.f32.partialorder %v165_v47, 1.0  ;;  %v162_v55 = vadd.f32 1e-10, %v161_v46 }
  0x6f   :  { %271 = vlog2.f32 %v140_v51  ;;  %v167_v52 = vsel %vm166_vm2, %v160_v41, %v165_v47  ;;  %v146_v54 = vadd.f32 %v135_v50, %v111_v45  ;;  %v192_v56 = vadd.f32 1e-10, %v187_v44 }
  0x70   :  { %273 = vlog2.f32 %v167_v52  ;;  %v189_v59 = vadd.f32 1e-10, %v188_v53 }
  0x71   :  { %vm193_vm3 = vcmp.gt.f32.partialorder %v192_v56, 1.0  ;;  %v173_v58 = vadd.f32 %v162_v55, %v146_v54 }
  0x72   :  { %v194_v57 = vsel %vm193_vm3, %v187_v44, %v192_v56 }
  0x73   :  { %275 = vlog2.f32 %v194_v57  ;;  %v200_v62 = vadd.f32 %v189_v59, %v173_v58 }
  0x75   :  { %277 = vrcp.f32 %v200_v62 }
  0x78   :  { %v270_v60 = vpop.eup %269 }
  0x79   :  { %v272_v63 = vpop.eup %271  ;;  %v117_v0 = vmul.f32 0.6931472, %v270_v60 }
  0x7a   :  { %v274_v2 = vpop.eup %273  ;;  %v142_v3 = vmul.f32 0.6931472, %v272_v63 }
  0x7b   :  { %v118_v5 = vadd.f32 %v117_v0, %v112_v61  ;;  %v169_v6 = vmul.f32 0.6931472, %v274_v2 }
  0x7c   :  { %v143_v7 = vadd.f32 %v142_v3, %v137_v1 }
  0x7d   :  { %v119_v8 = vmul.f32 %v118_v5, %v111_v45  ;;  %v170_v9 = vadd.f32 %v169_v6, %v164_v4  ;;  %v276_v10 = vpop.eup %275 }
  0x7e   :  { %v144_v11 = vmul.f32 %v143_v7, %v135_v50  ;;  %v196_v14 = vmul.f32 0.6931472, %v276_v10 }
  0x7f   :  { %v171_v13 = vmul.f32 %v170_v9, %v162_v55  ;;  %v278_v21 = vpop.eup %277 }
  0x80   :  { %v145_v15 = vadd.f32 %v144_v11, %v119_v8  ;;  %v197_v16 = vadd.f32 %v196_v14, %v191_v12 }
  0x82   :  { %v172_v17 = vadd.f32 %v171_v13, %v145_v15  ;;  %v198_v18 = vmul.f32 %v197_v16, %v189_v59 }
  0x84   :  { %v199_v20 = vadd.f32 %v198_v18, %v172_v17 }
  0x86   :  { %v201_v22 = vmul.f32 %v199_v20, %v96_v19 }
  0x88   :  { %v203_v23 = vmul.f32 %v278_v21, %v201_v22 }
  0x8a   :  { %211 = vadd.xlane.f32.xlu0 %v203_v23 }
 0x117   :  { %v212_v24 = vpop.xlane.xlu0 %211 }
 0x118   :  { %v213_v25 = vrot.slane %v212_v24, 4 }
 0x11a   :  { %v214_v26 = vadd.f32 %v213_v25, %v212_v24 }
 0x11c   :  { %v215_v27 = vrot.slane %v214_v26, 2 }
 0x11e   :  { %v216_v28 = vadd.f32 %v215_v27, %v214_v26 }
 0x120   :  { %v217_v29 = vrot.slane %v216_v28, 1 }
 0x122   :  { %v218_v30 = vadd.f32 %v217_v29, %v216_v28 }
 0x124   :  { %244 = vpush %v218_v30 }
 0x155   :  { %s245_s28 = spop %244 }
 0x156   :  { %v220_v31 = vstv %s245_s28 }
 0x157   :  { %222 = vst.msk [vmem:[#allocation11] sm:$0x1] %vm221_vm4, %v220_v31 }
 0x158   :  { %378 = shalt.err (!%p375_p8)
}
 0x159   :  { %s379_s15 = scalar_lea.hbm %s519_s4, 16 }
 0x15a   :  { %p380_p9 = scmp.ne.s32.totalorder %s519_s4, %s379_s15  ;;  %p383_p10 = scmp.lt.u32.totalorder %s379_s15, %s519_s4 }
 0x15c   :  { %p385_p11 = pnand %p383_p10, %p380_p9 }
 0x15e   :  { %388 = shalt.err (!%p385_p11)
}
 0x15f   :  { %232 = dma.vmem_to_hbm [thread:$0]  %s230_s27, 16, %s519_s4, [#allocation5]  }
 0x160   :  { %395 = dma.done.wait [#allocation5], 16  }
 0x161   :  { %396 = vsyncadd [#allocation5], 4294967280 }
 0x162   :  { %236 = vsyncpa [#allocation4], 1 }
 0x163   :  { %237 = vsyncpa [#allocation7], 1 }
 0x164   :  { %238 = vsyncpa [#allocation10], 1 }
 0x165   :  { %239 = vsyncpa [#allocation5], 1 }

</bundles_post_ra>
